<compile_context>
chip_gen: v7x
topology: tpu7x:2x2x1
jax: 0.10.0
libtpu: 0.0.40
codegen_flags: <defaults>
</compile_context>

<pallas_src>
import functools

import jax
import jax.numpy as jnp
from jax import lax
from jax.experimental import pallas as pl
from jax.experimental.pallas import tpu as pltpu


def _leaky_relu(x, slope=0.01):
    return jnp.where(x > 0, x, slope * x)


def _round_up(n, m):
    return (n + m - 1) // m * m


# ----------------------------------------------------------------------------
# Kernel
# ----------------------------------------------------------------------------
def fnn_residual_kernel(x_ref, w_in_ref, b_in_ref,
                        w_blk_ref, b_blk_ref, g_blk_ref, beta_blk_ref,
                        w_out_ref, b_out_ref, o_ref,
                        *, h_true, num_blocks, mm_dtype):
    inv_h = jnp.float32(1.0 / h_true)          # hoisted scalar (true hidden width)

    # input_fc + LeakyReLU (+ dropout == identity at inference)
    x = x_ref[...].astype(mm_dtype)
    out = jnp.dot(x, w_in_ref[...],
                  preferred_element_type=jnp.float32) + b_in_ref[...]
    out = _leaky_relu(out)

    def block(i, out):
        residual = out
        h = jnp.dot(out.astype(mm_dtype), w_blk_ref[i],
                    preferred_element_type=jnp.float32) + b_blk_ref[i]
        h = _leaky_relu(h)
        # dropout == identity at inference
        h = h + residual
        # Fused single-pass LayerNorm stats (eps=1e-5, biased variance).
        # Padded feature columns are exactly zero, so sums over the padded axis
        # equal sums over the true H features; divide by the true H.
        s = jnp.sum(h, axis=-1, keepdims=True)
        ssq = jnp.sum(h * h, axis=-1, keepdims=True)
        mean = s * inv_h
        var = jnp.maximum(ssq * inv_h - mean * mean, 0.0)
        h = (h - mean) * lax.rsqrt(var + 1e-5)
        h = h * g_blk_ref[i] + beta_blk_ref[i]     # padded gamma/beta are 0
        return _leaky_relu(h)

    if num_blocks <= 4:
        # small static unroll is fine (does not blow vreg live ranges)
        for i in range(num_blocks):
            out = block(i, out)
    else:
        # bound live ranges but keep LLO scheduler visibility
        out = lax.fori_loop(0, num_blocks, block, out, unroll=True)

    y = jnp.dot(out.astype(mm_dtype), w_out_ref[...],
                preferred_element_type=jnp.float32) + b_out_ref[...]
    o_ref[...] = y.astype(o_ref.dtype)


# ----------------------------------------------------------------------------
# Wrapper
# ----------------------------------------------------------------------------
def fnn_with_residual(x, params, *, batch_tile=None, use_bf16=True):
    """x: [B, input_dim] float32. params: dict of stacked weights (see init_params)."""
    B, D_in = x.shape
    H = params["w_in"].shape[1]
    D_out = params["w_out"].shape[1]
    NB = params["w_blk"].shape[0]

    mm_dtype = jnp.bfloat16 if use_bf16 else jnp.float32
    bpe = jnp.dtype(mm_dtype).itemsize
    f32 = jnp.float32

    # Lane-dense padding of feature dims (exact; see kernel comments).
    D_in_p = _round_up(D_in, 128)
    H_p = _round_up(H, 128)
    D_out_p = _round_up(D_out, 128)

    # Resident-weight VMEM bytes (matmul weights in mm_dtype, vectors in f32).
    weight_bytes = ((D_in_p * H_p + NB * H_p * H_p + H_p * D_out_p) * bpe
                    + (H_p + 3 * NB * H_p + D_out_p) * 4)

    def vmem_budget(bt):
        io = bt * (D_in_p + D_out_p) * 4        # x tile + out tile
        act = 8 * bt * H_p * 4                  # live activation temps (generous)
        return 2 * (weight_bytes + io) + act + (2 << 20)  # x2 double-buffering

    # Batch tile: as large as possible (amortize grid overhead, fill MXU M axis),
    # but capped so the explicit VMEM budget stays well under v7x's 64 MiB.
    if batch_tile is None:
        batch_tile = min(_round_up(B, 8), 256)
    batch_tile = max(8, _round_up(batch_tile, 8))
    while batch_tile > 8 and vmem_budget(batch_tile) > (48 << 20):
        batch_tile = max(8, _round_up(batch_tile // 2, 8))
    B_p = _round_up(B, batch_tile)              # ragged batches are zero-padded

    # --- pad / cast operands (zero padding everywhere) ---
    x_p = jnp.zeros((B_p, D_in_p), f32).at[:B, :D_in].set(x.astype(f32))
    w_in = jnp.zeros((D_in_p, H_p), mm_dtype).at[:D_in, :H].set(
        params["w_in"].astype(mm_dtype))
    b_in = jnp.zeros((1, H_p), f32).at[:, :H].set(params["b_in"])
    w_blk = jnp.zeros((NB, H_p, H_p), mm_dtype).at[:, :H, :H].set(
        params["w_blk"].astype(mm_dtype))
    b_blk = jnp.zeros((NB, 1, H_p), f32).at[:, :, :H].set(params["b_blk"])
    g_blk = jnp.zeros((NB, 1, H_p), f32).at[:, :, :H].set(params["g_blk"])
    beta_blk = jnp.zeros((NB, 1, H_p), f32).at[:, :, :H].set(params["beta_blk"])
    w_out = jnp.zeros((H_p, D_out_p), mm_dtype).at[:H, :D_out].set(
        params["w_out"].astype(mm_dtype))
    b_out = jnp.zeros((1, D_out_p), f32).at[:, :D_out].set(params["b_out"])

    grid = (B_p // batch_tile,)
    in_specs = [
        pl.BlockSpec((batch_tile, D_in_p), lambda i: (i, 0)),     # x (tiled over batch)
        pl.BlockSpec((D_in_p, H_p),        lambda i: (0, 0)),     # w_in (resident)
        pl.BlockSpec((1, H_p),             lambda i: (0, 0)),     # b_in
        pl.BlockSpec((NB, H_p, H_p),       lambda i: (0, 0, 0)),  # residual block weights
        pl.BlockSpec((NB, 1, H_p),         lambda i: (0, 0, 0)),  # residual block biases
        pl.BlockSpec((NB, 1, H_p),         lambda i: (0, 0, 0)),  # layernorm gamma
        pl.BlockSpec((NB, 1, H_p),         lambda i: (0, 0, 0)),  # layernorm beta
        pl.BlockSpec((H_p, D_out_p),       lambda i: (0, 0)),     # w_out
        pl.BlockSpec((1, D_out_p),         lambda i: (0, 0)),     # b_out
    ]
    out_spec = pl.BlockSpec((batch_tile, D_out_p), lambda i: (i, 0))  # lane-dense (x128)

    vmem_limit = int(min(max(vmem_budget(batch_tile), 16 << 20), 64 << 20))

    flops = int(2 * B_p * (D_in_p * H_p + NB * H_p * H_p + H_p * D_out_p))
    bytes_accessed = int(B_p * D_in_p * 4 + B_p * D_out_p * 4
                         + (D_in_p * H_p + NB * H_p * H_p + H_p * D_out_p) * bpe
                         + (H_p + 3 * NB * H_p + D_out_p) * 4)
    cost = pl.CostEstimate(flops=flops, transcendentals=0,
                           bytes_accessed=bytes_accessed)

    kernel = functools.partial(fnn_residual_kernel, h_true=H,
                               num_blocks=NB, mm_dtype=mm_dtype)

    y_p = pl.pallas_call(
        kernel,
        out_shape=jax.ShapeDtypeStruct((B_p, D_out_p), jnp.float32),
        grid=grid,
        in_specs=in_specs,
        out_specs=out_spec,
        compiler_params=pltpu.CompilerParams(
            dimension_semantics=("parallel",),   # v7x: >=2 grid steps -> both TCs
            vmem_limit_bytes=vmem_limit),
        cost_estimate=cost,
    )(x_p, w_in, b_in, w_blk, b_blk, g_blk, beta_blk, w_out, b_out)

    return y_p[:B, :D_out]


# ----------------------------------------------------------------------------
# Params / reference
# ----------------------------------------------------------------------------
def init_params(key, input_dim, hidden_dim, num_blocks, output_dim):
    """Deterministic init mimicking PyTorch nn.Linear (uniform +-1/sqrt(fan_in))."""
    ks = jax.random.split(key, 8)

    def lin(k, fan_in, fan_out):
        bound = 1.0 / jnp.sqrt(fan_in)
        kw, kb = jax.random.split(k)
        w = jax.random.uniform(kw, (fan_in, fan_out), jnp.float32, -bound, bound)
        b = jax.random.uniform(kb, (1, fan_out), jnp.float32, -bound, bound)
        return w, b

    w_in, b_in = lin(ks[0], input_dim, hidden_dim)
    w_out, b_out = lin(ks[1], hidden_dim, output_dim)

    blk_w, blk_b = [], []
    bk = jax.random.split(ks[2], num_blocks)
    for i in range(num_blocks):
        w, b = lin(bk[i], hidden_dim, hidden_dim)
        blk_w.append(w)
        blk_b.append(b[None])                     # -> (1, 1, H)
    w_blk = jnp.stack(blk_w, axis=0)              # (NB, H, H)
    b_blk = jnp.concatenate(blk_b, axis=0)        # (NB, 1, H)
    g_blk = jnp.ones((num_blocks, 1, hidden_dim), jnp.float32)      # LayerNorm weight
    beta_blk = jnp.zeros((num_blocks, 1, hidden_dim), jnp.float32)  # LayerNorm bias

    return dict(w_in=w_in, b_in=b_in, w_blk=w_blk, b_blk=b_blk,
                g_blk=g_blk, beta_blk=beta_blk, w_out=w_out, b_out=b_out)


def fnn_reference(x, params):
    """Pure-JAX f32 reference of the same forward (for verification)."""
    out = _leaky_relu(x @ params["w_in"] + params["b_in"])
    for i in range(params["w_blk"].shape[0]):
        residual = out
        h = _leaky_relu(out @ params["w_blk"][i] + params["b_blk"][i])
        h = h + residual
        mean = jnp.mean(h, axis=-1, keepdims=True)
        var = jnp.mean((h - mean) ** 2, axis=-1, keepdims=True)
        h = (h - mean) / jnp.sqrt(var + 1e-5)
        h = h * params["g_blk"][i] + params["beta_blk"][i]
        out = _leaky_relu(h)
    return out @ params["w_out"] + params["b_out"]


# ----------------------------------------------------------------------------
# Demo / self-test
# ----------------------------------------------------------------------------
if __name__ == "__main__":
    # Small shapes consistent with the module: input_dim = 6 cases x merged
    # per-case features, hidden_dim, a few residual blocks, output_dim = nelem.
    B = 16
    input_dim = 96          # 6 cases x 16 merged features
    hidden_dim = 32
    num_residual_blocks = 3
    output_dim = 100        # nelem

    key = jax.random.PRNGKey(0)
    kx, kp = jax.random.split(key)
    x = jax.random.normal(kx, (B, input_dim), jnp.float32)
    params = init_params(kp, input_dim, hidden_dim, num_residual_blocks, output_dim)

    y_ref = fnn_reference(x, params)

    # 1) exact-math path (f32 matmuls): verifies kernel logic / padding precisely.
    y_f32 = jax.block_until_ready(fnn_with_residual(x, params, use_bf16=False))
    assert y_f32.shape == (B, output_dim)
    assert jnp.allclose(y_f32, y_ref, atol=5e-4, rtol=5e-4), "f32 kernel mismatch"

    # 2) performance path (bf16 MXU operands, f32 accumulation): loose tolerance.
    y_bf16 = jax.block_until_ready(fnn_with_residual(x, params, use_bf16=True))
    assert y_bf16.shape == (B, output_dim)
    rel_l2 = float(jnp.linalg.norm(y_bf16 - y_ref) / (jnp.linalg.norm(y_ref) + 1e-12))
    assert rel_l2 < 0.05, f"bf16 kernel rel-L2 error too large: {rel_l2}"

    print("KERNEL_OK")
</pallas_src>

<mosaic_0001>
module attributes {stable_mosaic.version = 11 : i64} {
  func.func @fnn_residual_kernel(%arg0: i32, %arg1: memref<16x128xf32, #tpu.memory_space<vmem>>, %arg2: memref<128x128xf32, #tpu.memory_space<vmem>>, %arg3: memref<1x128xf32, #tpu.memory_space<vmem>>, %arg4: memref<3x128x128xf32, #tpu.memory_space<vmem>>, %arg5: memref<3x1x128xf32, #tpu.memory_space<vmem>>, %arg6: memref<3x1x128xf32, #tpu.memory_space<vmem>>, %arg7: memref<3x1x128xf32, #tpu.memory_space<vmem>>, %arg8: memref<128x128xf32, #tpu.memory_space<vmem>>, %arg9: memref<1x128xf32, #tpu.memory_space<vmem>>, %arg10: memref<16x128xf32, #tpu.memory_space<vmem>>) attributes {dimension_semantics = [#tpu.dimension_semantics<parallel>], iteration_bounds = array<i64: 1>, scalar_prefetch = 0 : i64, scratch_operands = 0 : i64, tpu.core_type = #tpu.core_type<tc>, window_params = [{transform_indices = @transform_0, window_bounds = array<i64: 16, 128>}, {pipeline_mode = #tpu.pipeline_mode<synchronous>, transform_indices = @transform_1, window_bounds = array<i64: 128, 128>}, {pipeline_mode = #tpu.pipeline_mode<synchronous>, transform_indices = @transform_2, window_bounds = array<i64: 1, 128>}, {pipeline_mode = #tpu.pipeline_mode<synchronous>, transform_indices = @transform_3, window_bounds = array<i64: 3, 128, 128>}, {pipeline_mode = #tpu.pipeline_mode<synchronous>, transform_indices = @transform_4, window_bounds = array<i64: 3, 1, 128>}, {pipeline_mode = #tpu.pipeline_mode<synchronous>, transform_indices = @transform_5, window_bounds = array<i64: 3, 1, 128>}, {pipeline_mode = #tpu.pipeline_mode<synchronous>, transform_indices = @transform_6, window_bounds = array<i64: 3, 1, 128>}, {pipeline_mode = #tpu.pipeline_mode<synchronous>, transform_indices = @transform_7, window_bounds = array<i64: 128, 128>}, {pipeline_mode = #tpu.pipeline_mode<synchronous>, transform_indices = @transform_8, window_bounds = array<i64: 1, 128>}, {transform_indices = @transform_9, window_bounds = array<i64: 16, 128>}]} {
    %c0 = arith.constant 0 : index
    %c0_0 = arith.constant 0 : index
    %0 = vector.load %arg1[%c0, %c0_0] : memref<16x128xf32, #tpu.memory_space<vmem>>, vector<16x128xf32>
    %c0_1 = arith.constant 0 : index
    %c0_2 = arith.constant 0 : index
    %1 = vector.load %arg2[%c0_1, %c0_2] : memref<128x128xf32, #tpu.memory_space<vmem>>, vector<128x128xf32>
    %cst = arith.constant dense<0.000000e+00> : vector<16x128xf32>
    %2 = tpu.matmul %0, %1, %cst {dimension_numbers = #tpu.dot_dimension_numbers<[1], [0], [0], [1], [0, 0, 1, 1], [], []>} : vector<16x128xf32>, vector<128x128xf32>, vector<16x128xf32> -> vector<16x128xf32>
    %c0_3 = arith.constant 0 : index
    %c0_4 = arith.constant 0 : index
    %3 = vector.load %arg3[%c0_3, %c0_4] : memref<1x128xf32, #tpu.memory_space<vmem>>, vector<1x128xf32>
    %4 = vector.broadcast %3 : vector<1x128xf32> to vector<16x128xf32>
    %5 = arith.addf %2, %4 : vector<16x128xf32>
    %cst_5 = arith.constant 0.000000e+00 : f32
    %6 = vector.broadcast %cst_5 : f32 to vector<16x128xf32>
    %7 = arith.cmpf ogt, %5, %6 : vector<16x128xf32>
    %cst_6 = arith.constant 0.00999999977 : f32
    %8 = vector.broadcast %cst_6 : f32 to vector<16x128xf32>
    %9 = arith.mulf %8, %5 : vector<16x128xf32>
    %10 = arith.select %7, %5, %9 : vector<16x128xi1>, vector<16x128xf32>
    %c0_7 = arith.constant 0 : index
    %c0_8 = arith.constant 0 : index
    %c0_9 = arith.constant 0 : index
    %11 = vector.load %arg4[%c0_7, %c0_8, %c0_9] : memref<3x128x128xf32, #tpu.memory_space<vmem>>, vector<1x128x128xf32>
    %12 = vector.shape_cast %11 : vector<1x128x128xf32> to vector<128x128xf32>
    %cst_10 = arith.constant dense<0.000000e+00> : vector<16x128xf32>
    %13 = tpu.matmul %10, %12, %cst_10 {dimension_numbers = #tpu.dot_dimension_numbers<[1], [0], [0], [1], [0, 0, 1, 1], [], []>} : vector<16x128xf32>, vector<128x128xf32>, vector<16x128xf32> -> vector<16x128xf32>
    %c0_11 = arith.constant 0 : index
    %c0_12 = arith.constant 0 : index
    %c0_13 = arith.constant 0 : index
    %14 = vector.load %arg5[%c0_11, %c0_12, %c0_13] : memref<3x1x128xf32, #tpu.memory_space<vmem>>, vector<1x1x128xf32>
    %15 = vector.shape_cast %14 : vector<1x1x128xf32> to vector<1x128xf32>
    %16 = vector.broadcast %15 : vector<1x128xf32> to vector<16x128xf32>
    %17 = arith.addf %13, %16 : vector<16x128xf32>
    %cst_14 = arith.constant 0.000000e+00 : f32
    %18 = vector.broadcast %cst_14 : f32 to vector<16x128xf32>
    %19 = arith.cmpf ogt, %17, %18 : vector<16x128xf32>
    %cst_15 = arith.constant 0.00999999977 : f32
    %20 = vector.broadcast %cst_15 : f32 to vector<16x128xf32>
    %21 = arith.mulf %20, %17 : vector<16x128xf32>
    %22 = arith.select %19, %17, %21 : vector<16x128xi1>, vector<16x128xf32>
    %23 = arith.addf %22, %10 : vector<16x128xf32>
    %cst_16 = arith.constant dense<0.000000e+00> : vector<16xf32>
    %24 = vector.multi_reduction <add>, %23, %cst_16 [1] : vector<16x128xf32> to vector<16xf32>
    %25 = vector.shape_cast %24 : vector<16xf32> to vector<16x1xf32>
    %26 = arith.mulf %23, %23 : vector<16x128xf32>
    %cst_17 = arith.constant dense<0.000000e+00> : vector<16xf32>
    %27 = vector.multi_reduction <add>, %26, %cst_17 [1] : vector<16x128xf32> to vector<16xf32>
    %28 = vector.shape_cast %27 : vector<16xf32> to vector<16x1xf32>
    %cst_18 = arith.constant 3.125000e-02 : f32
    %29 = vector.broadcast %cst_18 : f32 to vector<16x1xf32>
    %30 = arith.mulf %25, %29 : vector<16x1xf32>
    %cst_19 = arith.constant 3.125000e-02 : f32
    %31 = vector.broadcast %cst_19 : f32 to vector<16x1xf32>
    %32 = arith.mulf %28, %31 : vector<16x1xf32>
    %33 = arith.mulf %30, %30 : vector<16x1xf32>
    %34 = arith.subf %32, %33 : vector<16x1xf32>
    %cst_20 = arith.constant 0.000000e+00 : f32
    %35 = vector.broadcast %cst_20 : f32 to vector<16x1xf32>
    %36 = arith.maximumf %34, %35 : vector<16x1xf32>
    %37 = vector.broadcast %30 : vector<16x1xf32> to vector<16x128xf32>
    %38 = arith.subf %23, %37 : vector<16x128xf32>
    %cst_21 = arith.constant 9.99999974E-6 : f32
    %39 = vector.broadcast %cst_21 : f32 to vector<16x1xf32>
    %40 = arith.addf %36, %39 : vector<16x1xf32>
    %41 = math.rsqrt %40 : vector<16x1xf32>
    %42 = vector.broadcast %41 : vector<16x1xf32> to vector<16x128xf32>
    %43 = arith.mulf %38, %42 : vector<16x128xf32>
    %c0_22 = arith.constant 0 : index
    %c0_23 = arith.constant 0 : index
    %c0_24 = arith.constant 0 : index
    %44 = vector.load %arg6[%c0_22, %c0_23, %c0_24] : memref<3x1x128xf32, #tpu.memory_space<vmem>>, vector<1x1x128xf32>
    %45 = vector.shape_cast %44 : vector<1x1x128xf32> to vector<1x128xf32>
    %46 = vector.broadcast %45 : vector<1x128xf32> to vector<16x128xf32>
    %47 = arith.mulf %43, %46 : vector<16x128xf32>
    %c0_25 = arith.constant 0 : index
    %c0_26 = arith.constant 0 : index
    %c0_27 = arith.constant 0 : index
    %48 = vector.load %arg7[%c0_25, %c0_26, %c0_27] : memref<3x1x128xf32, #tpu.memory_space<vmem>>, vector<1x1x128xf32>
    %49 = vector.shape_cast %48 : vector<1x1x128xf32> to vector<1x128xf32>
    %50 = vector.broadcast %49 : vector<1x128xf32> to vector<16x128xf32>
    %51 = arith.addf %47, %50 : vector<16x128xf32>
    %cst_28 = arith.constant 0.000000e+00 : f32
    %52 = vector.broadcast %cst_28 : f32 to vector<16x128xf32>
    %53 = arith.cmpf ogt, %51, %52 : vector<16x128xf32>
    %cst_29 = arith.constant 0.00999999977 : f32
    %54 = vector.broadcast %cst_29 : f32 to vector<16x128xf32>
    %55 = arith.mulf %54, %51 : vector<16x128xf32>
    %56 = arith.select %53, %51, %55 : vector<16x128xi1>, vector<16x128xf32>
    %c1 = arith.constant 1 : index
    %c0_30 = arith.constant 0 : index
    %c0_31 = arith.constant 0 : index
    %57 = vector.load %arg4[%c1, %c0_30, %c0_31] : memref<3x128x128xf32, #tpu.memory_space<vmem>>, vector<1x128x128xf32>
    %58 = vector.shape_cast %57 : vector<1x128x128xf32> to vector<128x128xf32>
    %cst_32 = arith.constant dense<0.000000e+00> : vector<16x128xf32>
    %59 = tpu.matmul %56, %58, %cst_32 {dimension_numbers = #tpu.dot_dimension_numbers<[1], [0], [0], [1], [0, 0, 1, 1], [], []>} : vector<16x128xf32>, vector<128x128xf32>, vector<16x128xf32> -> vector<16x128xf32>
    %c1_33 = arith.constant 1 : index
    %c0_34 = arith.constant 0 : index
    %c0_35 = arith.constant 0 : index
    %60 = vector.load %arg5[%c1_33, %c0_34, %c0_35] : memref<3x1x128xf32, #tpu.memory_space<vmem>>, vector<1x1x128xf32>
    %61 = vector.shape_cast %60 : vector<1x1x128xf32> to vector<1x128xf32>
    %62 = vector.broadcast %61 : vector<1x128xf32> to vector<16x128xf32>
    %63 = arith.addf %59, %62 : vector<16x128xf32>
    %cst_36 = arith.constant 0.000000e+00 : f32
    %64 = vector.broadcast %cst_36 : f32 to vector<16x128xf32>
    %65 = arith.cmpf ogt, %63, %64 : vector<16x128xf32>
    %cst_37 = arith.constant 0.00999999977 : f32
    %66 = vector.broadcast %cst_37 : f32 to vector<16x128xf32>
    %67 = arith.mulf %66, %63 : vector<16x128xf32>
    %68 = arith.select %65, %63, %67 : vector<16x128xi1>, vector<16x128xf32>
    %69 = arith.addf %68, %56 : vector<16x128xf32>
    %cst_38 = arith.constant dense<0.000000e+00> : vector<16xf32>
    %70 = vector.multi_reduction <add>, %69, %cst_38 [1] : vector<16x128xf32> to vector<16xf32>
    %71 = vector.shape_cast %70 : vector<16xf32> to vector<16x1xf32>
    %72 = arith.mulf %69, %69 : vector<16x128xf32>
    %cst_39 = arith.constant dense<0.000000e+00> : vector<16xf32>
    %73 = vector.multi_reduction <add>, %72, %cst_39 [1] : vector<16x128xf32> to vector<16xf32>
    %74 = vector.shape_cast %73 : vector<16xf32> to vector<16x1xf32>
    %cst_40 = arith.constant 3.125000e-02 : f32
    %75 = vector.broadcast %cst_40 : f32 to vector<16x1xf32>
    %76 = arith.mulf %71, %75 : vector<16x1xf32>
    %cst_41 = arith.constant 3.125000e-02 : f32
    %77 = vector.broadcast %cst_41 : f32 to vector<16x1xf32>
    %78 = arith.mulf %74, %77 : vector<16x1xf32>
    %79 = arith.mulf %76, %76 : vector<16x1xf32>
    %80 = arith.subf %78, %79 : vector<16x1xf32>
    %cst_42 = arith.constant 0.000000e+00 : f32
    %81 = vector.broadcast %cst_42 : f32 to vector<16x1xf32>
    %82 = arith.maximumf %80, %81 : vector<16x1xf32>
    %83 = vector.broadcast %76 : vector<16x1xf32> to vector<16x128xf32>
    %84 = arith.subf %69, %83 : vector<16x128xf32>
    %cst_43 = arith.constant 9.99999974E-6 : f32
    %85 = vector.broadcast %cst_43 : f32 to vector<16x1xf32>
    %86 = arith.addf %82, %85 : vector<16x1xf32>
    %87 = math.rsqrt %86 : vector<16x1xf32>
    %88 = vector.broadcast %87 : vector<16x1xf32> to vector<16x128xf32>
    %89 = arith.mulf %84, %88 : vector<16x128xf32>
    %c1_44 = arith.constant 1 : index
    %c0_45 = arith.constant 0 : index
    %c0_46 = arith.constant 0 : index
    %90 = vector.load %arg6[%c1_44, %c0_45, %c0_46] : memref<3x1x128xf32, #tpu.memory_space<vmem>>, vector<1x1x128xf32>
    %91 = vector.shape_cast %90 : vector<1x1x128xf32> to vector<1x128xf32>
    %92 = vector.broadcast %91 : vector<1x128xf32> to vector<16x128xf32>
    %93 = arith.mulf %89, %92 : vector<16x128xf32>
    %c1_47 = arith.constant 1 : index
    %c0_48 = arith.constant 0 : index
    %c0_49 = arith.constant 0 : index
    %94 = vector.load %arg7[%c1_47, %c0_48, %c0_49] : memref<3x1x128xf32, #tpu.memory_space<vmem>>, vector<1x1x128xf32>
    %95 = vector.shape_cast %94 : vector<1x1x128xf32> to vector<1x128xf32>
    %96 = vector.broadcast %95 : vector<1x128xf32> to vector<16x128xf32>
    %97 = arith.addf %93, %96 : vector<16x128xf32>
    %cst_50 = arith.constant 0.000000e+00 : f32
    %98 = vector.broadcast %cst_50 : f32 to vector<16x128xf32>
    %99 = arith.cmpf ogt, %97, %98 : vector<16x128xf32>
    %cst_51 = arith.constant 0.00999999977 : f32
    %100 = vector.broadcast %cst_51 : f32 to vector<16x128xf32>
    %101 = arith.mulf %100, %97 : vector<16x128xf32>
    %102 = arith.select %99, %97, %101 : vector<16x128xi1>, vector<16x128xf32>
    %c2 = arith.constant 2 : index
    %c0_52 = arith.constant 0 : index
    %c0_53 = arith.constant 0 : index
    %103 = vector.load %arg4[%c2, %c0_52, %c0_53] : memref<3x128x128xf32, #tpu.memory_space<vmem>>, vector<1x128x128xf32>
    %104 = vector.shape_cast %103 : vector<1x128x128xf32> to vector<128x128xf32>
    %cst_54 = arith.constant dense<0.000000e+00> : vector<16x128xf32>
    %105 = tpu.matmul %102, %104, %cst_54 {dimension_numbers = #tpu.dot_dimension_numbers<[1], [0], [0], [1], [0, 0, 1, 1], [], []>} : vector<16x128xf32>, vector<128x128xf32>, vector<16x128xf32> -> vector<16x128xf32>
    %c2_55 = arith.constant 2 : index
    %c0_56 = arith.constant 0 : index
    %c0_57 = arith.constant 0 : index
    %106 = vector.load %arg5[%c2_55, %c0_56, %c0_57] : memref<3x1x128xf32, #tpu.memory_space<vmem>>, vector<1x1x128xf32>
    %107 = vector.shape_cast %106 : vector<1x1x128xf32> to vector<1x128xf32>
    %108 = vector.broadcast %107 : vector<1x128xf32> to vector<16x128xf32>
    %109 = arith.addf %105, %108 : vector<16x128xf32>
    %cst_58 = arith.constant 0.000000e+00 : f32
    %110 = vector.broadcast %cst_58 : f32 to vector<16x128xf32>
    %111 = arith.cmpf ogt, %109, %110 : vector<16x128xf32>
    %cst_59 = arith.constant 0.00999999977 : f32
    %112 = vector.broadcast %cst_59 : f32 to vector<16x128xf32>
    %113 = arith.mulf %112, %109 : vector<16x128xf32>
    %114 = arith.select %111, %109, %113 : vector<16x128xi1>, vector<16x128xf32>
    %115 = arith.addf %114, %102 : vector<16x128xf32>
    %cst_60 = arith.constant dense<0.000000e+00> : vector<16xf32>
    %116 = vector.multi_reduction <add>, %115, %cst_60 [1] : vector<16x128xf32> to vector<16xf32>
    %117 = vector.shape_cast %116 : vector<16xf32> to vector<16x1xf32>
    %118 = arith.mulf %115, %115 : vector<16x128xf32>
    %cst_61 = arith.constant dense<0.000000e+00> : vector<16xf32>
    %119 = vector.multi_reduction <add>, %118, %cst_61 [1] : vector<16x128xf32> to vector<16xf32>
    %120 = vector.shape_cast %119 : vector<16xf32> to vector<16x1xf32>
    %cst_62 = arith.constant 3.125000e-02 : f32
    %121 = vector.broadcast %cst_62 : f32 to vector<16x1xf32>
    %122 = arith.mulf %117, %121 : vector<16x1xf32>
    %cst_63 = arith.constant 3.125000e-02 : f32
    %123 = vector.broadcast %cst_63 : f32 to vector<16x1xf32>
    %124 = arith.mulf %120, %123 : vector<16x1xf32>
    %125 = arith.mulf %122, %122 : vector<16x1xf32>
    %126 = arith.subf %124, %125 : vector<16x1xf32>
    %cst_64 = arith.constant 0.000000e+00 : f32
    %127 = vector.broadcast %cst_64 : f32 to vector<16x1xf32>
    %128 = arith.maximumf %126, %127 : vector<16x1xf32>
    %129 = vector.broadcast %122 : vector<16x1xf32> to vector<16x128xf32>
    %130 = arith.subf %115, %129 : vector<16x128xf32>
    %cst_65 = arith.constant 9.99999974E-6 : f32
    %131 = vector.broadcast %cst_65 : f32 to vector<16x1xf32>
    %132 = arith.addf %128, %131 : vector<16x1xf32>
    %133 = math.rsqrt %132 : vector<16x1xf32>
    %134 = vector.broadcast %133 : vector<16x1xf32> to vector<16x128xf32>
    %135 = arith.mulf %130, %134 : vector<16x128xf32>
    %c2_66 = arith.constant 2 : index
    %c0_67 = arith.constant 0 : index
    %c0_68 = arith.constant 0 : index
    %136 = vector.load %arg6[%c2_66, %c0_67, %c0_68] : memref<3x1x128xf32, #tpu.memory_space<vmem>>, vector<1x1x128xf32>
    %137 = vector.shape_cast %136 : vector<1x1x128xf32> to vector<1x128xf32>
    %138 = vector.broadcast %137 : vector<1x128xf32> to vector<16x128xf32>
    %139 = arith.mulf %135, %138 : vector<16x128xf32>
    %c2_69 = arith.constant 2 : index
    %c0_70 = arith.constant 0 : index
    %c0_71 = arith.constant 0 : index
    %140 = vector.load %arg7[%c2_69, %c0_70, %c0_71] : memref<3x1x128xf32, #tpu.memory_space<vmem>>, vector<1x1x128xf32>
    %141 = vector.shape_cast %140 : vector<1x1x128xf32> to vector<1x128xf32>
    %142 = vector.broadcast %141 : vector<1x128xf32> to vector<16x128xf32>
    %143 = arith.addf %139, %142 : vector<16x128xf32>
    %cst_72 = arith.constant 0.000000e+00 : f32
    %144 = vector.broadcast %cst_72 : f32 to vector<16x128xf32>
    %145 = arith.cmpf ogt, %143, %144 : vector<16x128xf32>
    %cst_73 = arith.constant 0.00999999977 : f32
    %146 = vector.broadcast %cst_73 : f32 to vector<16x128xf32>
    %147 = arith.mulf %146, %143 : vector<16x128xf32>
    %148 = arith.select %145, %143, %147 : vector<16x128xi1>, vector<16x128xf32>
    %c0_74 = arith.constant 0 : index
    %c0_75 = arith.constant 0 : index
    %149 = vector.load %arg8[%c0_74, %c0_75] : memref<128x128xf32, #tpu.memory_space<vmem>>, vector<128x128xf32>
    %cst_76 = arith.constant dense<0.000000e+00> : vector<16x128xf32>
    %150 = tpu.matmul %148, %149, %cst_76 {dimension_numbers = #tpu.dot_dimension_numbers<[1], [0], [0], [1], [0, 0, 1, 1], [], []>} : vector<16x128xf32>, vector<128x128xf32>, vector<16x128xf32> -> vector<16x128xf32>
    %c0_77 = arith.constant 0 : index
    %c0_78 = arith.constant 0 : index
    %151 = vector.load %arg9[%c0_77, %c0_78] : memref<1x128xf32, #tpu.memory_space<vmem>>, vector<1x128xf32>
    %152 = vector.broadcast %151 : vector<1x128xf32> to vector<16x128xf32>
    %153 = arith.addf %150, %152 : vector<16x128xf32>
    %c0_79 = arith.constant 0 : index
    %c0_80 = arith.constant 0 : index
    %154 = vector.load %arg10[%c0_79, %c0_80] : memref<16x128xf32, #tpu.memory_space<vmem>>, vector<16x128xf32>
    tpu.vector_store %arg10[%c0_79, %c0_80], %153 {strides = array<i32>} : memref<16x128xf32, #tpu.memory_space<vmem>>, vector<16x128xf32>,
    return
  }
  func.func @transform_0(%arg0: i32) -> (i32, i32) {
    %c0_i32 = arith.constant 0 : i32
    %c0_i32_0 = arith.constant 0 : i32
    return %arg0, %c0_i32 : i32, i32
  }
  func.func @transform_1(%arg0: i32) -> (i32, i32) {
    %c0_i32 = arith.constant 0 : i32
    %c0_i32_0 = arith.constant 0 : i32
    %c0_i32_1 = arith.constant 0 : i32
    return %c0_i32, %c0_i32_0 : i32, i32
  }
  func.func @transform_2(%arg0: i32) -> (i32, i32) {
    %c0_i32 = arith.constant 0 : i32
    %c0_i32_0 = arith.constant 0 : i32
    %c0_i32_1 = arith.constant 0 : i32
    return %c0_i32, %c0_i32_0 : i32, i32
  }
  func.func @transform_3(%arg0: i32) -> (i32, i32, i32) {
    %c0_i32 = arith.constant 0 : i32
    %c0_i32_0 = arith.constant 0 : i32
    %c0_i32_1 = arith.constant 0 : i32
    %c0_i32_2 = arith.constant 0 : i32
    return %c0_i32, %c0_i32_0, %c0_i32_1 : i32, i32, i32
  }
  func.func @transform_4(%arg0: i32) -> (i32, i32, i32) {
    %c0_i32 = arith.constant 0 : i32
    %c0_i32_0 = arith.constant 0 : i32
    %c0_i32_1 = arith.constant 0 : i32
    %c0_i32_2 = arith.constant 0 : i32
    return %c0_i32, %c0_i32_0, %c0_i32_1 : i32, i32, i32
  }
  func.func @transform_5(%arg0: i32) -> (i32, i32, i32) {
    %c0_i32 = arith.constant 0 : i32
    %c0_i32_0 = arith.constant 0 : i32
    %c0_i32_1 = arith.constant 0 : i32
    %c0_i32_2 = arith.constant 0 : i32
    return %c0_i32, %c0_i32_0, %c0_i32_1 : i32, i32, i32
  }
  func.func @transform_6(%arg0: i32) -> (i32, i32, i32) {
    %c0_i32 = arith.constant 0 : i32
    %c0_i32_0 = arith.constant 0 : i32
    %c0_i32_1 = arith.constant 0 : i32
    %c0_i32_2 = arith.constant 0 : i32
    return %c0_i32, %c0_i32_0, %c0_i32_1 : i32, i32, i32
  }
  func.func @transform_7(%arg0: i32) -> (i32, i32) {
    %c0_i32 = arith.constant 0 : i32
    %c0_i32_0 = arith.constant 0 : i32
    %c0_i32_1 = arith.constant 0 : i32
    return %c0_i32, %c0_i32_0 : i32, i32
  }
  func.func @transform_8(%arg0: i32) -> (i32, i32) {
    %c0_i32 = arith.constant 0 : i32
    %c0_i32_0 = arith.constant 0 : i32
    %c0_i32_1 = arith.constant 0 : i32
    return %c0_i32, %c0_i32_0 : i32, i32
  }
  func.func @transform_9(%arg0: i32) -> (i32, i32) {
    %c0_i32 = arith.constant 0 : i32
    %c0_i32_0 = arith.constant 0 : i32
    return %arg0, %c0_i32 : i32, i32
  }
}

</mosaic_0001>

<bundles_post_ra>
// kernel: tpu_custom_call.1
= control target key start
LH: loop header
LB: loop body
LE: loop exit
PB: predicated region body
PF: predicated region fallthrough
CT: control target
= control target key end

     0   :  { %14 = vsyncpa [#allocation3], 0  ;;  %s1589_s0 = inlined_call_operand.hbm [shape: f32[16,128], index: 0, kind: input, shape index: {}]   ;;  %s1590_s1 = inlined_call_operand.hbm [shape: f32[128,128], index: 1, kind: input, shape index: {}]   ;;  %s1591_s2 = inlined_call_operand.vmem [shape: f32[1,128], index: 2, kind: input, shape index: {}]   ;;  %s1592_s3 = inlined_call_operand.hbm [shape: f32[3,128,128], index: 3, kind: input, shape index: {}]   ;;  %s1593_s4 = inlined_call_operand.vmem [shape: f32[3,1,128], index: 4, kind: input, shape index: {}]   ;;  %s1594_s5 = inlined_call_operand.vmem [shape: f32[3,1,128], index: 5, kind: input, shape index: {}]   ;;  %s1595_s6 = inlined_call_operand.vmem [shape: f32[3,1,128], index: 6, kind: input, shape index: {}]   ;;  %s1596_s7 = inlined_call_operand.hbm [shape: f32[128,128], index: 7, kind: input, shape index: {}]   ;;  %s1597_s8 = inlined_call_operand.vmem [shape: f32[1,128], index: 8, kind: input, shape index: {}]   ;;  %s1598_s9 = inlined_call_operand.hbm [shape: f32[16,128], index: 9, kind: output, shape index: {}]  }
   0x1   :  { %15 = vsyncpa [#allocation6], 0 }
   0x2   :  { %16 = vsyncpa [#allocation9], 0 }
   0x3   :  { %17 = vsyncpa [#allocation4], 0  ;;  %s1374_s30 = smov [#allocation5]   ;;  %s1375_s11 = smov [#allocation2]  }
   0x4   :  { %s35_s10 = sshll.u32 %s1374_s30, 4  ;;  %s23_s12 = sshll.u32 %s1375_s11, 4  ;;  %s36_s10 = int_to_ptr.vmem [resolvable:$true] %s35_s10  ;;  %s1431_s12 = int_to_ptr.vmem [resolvable:$true] %s23_s12 }
   0x5   :  { %s1256_s15 = scalar_lea.hbm %s1590_s1, 2048 }
   0x6   :  { %p1257_p0 = scmp.ne.s32.totalorder %s1590_s1, %s1256_s15  ;;  %p1260_p1 = scmp.lt.u32.totalorder %s1256_s15, %s1590_s1 }
   0x8   :  { %p1262_p2 = pnand %p1260_p1, %p1257_p0 }
   0xa   :  { %1265 = shalt.err (!%p1262_p2)
}
   0xb   :  { %s1266_s20 = scalar_lea.vmem %s36_s10, 2048  ;;  %p1271_p4 = scmp.lt.s32.totalorder %s36_s10, %s36_s10 }
   0xc   :  { %p1267_p3 = scmp.ne.s32.totalorder %s36_s10, %s1266_s20  ;;  %p1272_p5 = scmp.lt.s32.totalorder %s1266_s20, %s1266_s20 }
   0xe   :  { %p1273_p6 = por %p1272_p5, %p1271_p4 }
  0x10   :  { %p1274_p7 = pnand %p1273_p6, %p1267_p3 }
  0x12   :  { %1277 = shalt.err (!%p1274_p7)
}
  0x13   :  { %s1376_s21 = smov 128   ;;  %s1377_s22 = smov 8  }
  0x14   :  { %41 = dma.hbm_to_vmem [thread:$0]  %s1590_s1, 2048, %s36_s10, [#allocation6], %s1376_s21, %s1376_s21, %s1377_s22  }
  0x15   :  { %s1278_s27 = scalar_lea.hbm %s1589_s0, 256 }
  0x16   :  { %p1279_p8 = scmp.ne.s32.totalorder %s1589_s0, %s1278_s27  ;;  %p1282_p9 = scmp.lt.u32.totalorder %s1278_s27, %s1589_s0 }
  0x18   :  { %p1284_p10 = pnand %p1282_p9, %p1279_p8 }
  0x1a   :  { %1287 = shalt.err (!%p1284_p10)
}
  0x1b   :  { %s1288_s13 = scalar_lea.vmem %s1431_s12, 256  ;;  %p1293_p12 = scmp.lt.s32.totalorder %s1431_s12, %s1431_s12 }
  0x1c   :  { %p1289_p11 = scmp.ne.s32.totalorder %s1431_s12, %s1288_s13  ;;  %p1294_p13 = scmp.lt.s32.totalorder %s1288_s13, %s1288_s13 }
  0x1e   :  { %p1295_p0 = por %p1294_p13, %p1293_p12 }
  0x20   :  { %p1296_p1 = pnand %p1295_p0, %p1289_p11 }
  0x22   :  { %1299 = shalt.err (!%p1296_p1)
}
  0x23   :  { %29 = dma.hbm_to_vmem [thread:$0]  %s1589_s0, 256, %s1431_s12, [#allocation3], %s1376_s21, %s1376_s21, %s1377_s22  }
  0x24   :  { %s1378_s14 = smov [#allocation7]   ;;  %s1379_s16 = smov [#allocation8]  }
  0x25   :  { %s49_s15 = sshll.u32 %s1378_s14, 4  ;;  %s67_s17 = sshll.u32 %s1379_s16, 4  ;;  %s50_s15 = int_to_ptr.vmem [resolvable:$true] %s49_s15  ;;  %s1468_s17 = int_to_ptr.vmem [resolvable:$true] %s67_s17 }
  0x26   :  { %s1300_s20 = scalar_lea.hbm %s1592_s3, 6144 }
  0x27   :  { %p1301_p2 = scmp.ne.s32.totalorder %s1592_s3, %s1300_s20  ;;  %p1304_p3 = scmp.lt.u32.totalorder %s1300_s20, %s1592_s3 }
  0x29   :  { %p1306_p4 = pnand %p1304_p3, %p1301_p2 }
  0x2b   :  { %1309 = shalt.err (!%p1306_p4)
}
  0x2c   :  { %s1310_s0 = scalar_lea.vmem %s50_s15, 6144  ;;  %p1315_p6 = scmp.lt.s32.totalorder %s50_s15, %s50_s15 }
  0x2d   :  { %p1311_p5 = scmp.ne.s32.totalorder %s50_s15, %s1310_s0  ;;  %p1316_p7 = scmp.lt.s32.totalorder %s1310_s0, %s1310_s0 }
  0x2f   :  { %p1317_p8 = por %p1316_p7, %p1315_p6 }
  0x31   :  { %p1318_p9 = pnand %p1317_p8, %p1311_p5 }
  0x33   :  { %1321 = shalt.err (!%p1318_p9)
}
  0x34   :  { %55 = dma.hbm_to_vmem [thread:$0]  %s1592_s3, 6144, %s50_s15, [#allocation6], %s1376_s21, %s1376_s21, %s1377_s22  }
  0x35   :  { %s1322_s30 = scalar_lea.hbm %s1596_s7, 2048 }
  0x36   :  { %p1323_p10 = scmp.ne.s32.totalorder %s1596_s7, %s1322_s30  ;;  %p1326_p11 = scmp.lt.u32.totalorder %s1322_s30, %s1596_s7 }
  0x38   :  { %p1328_p12 = pnand %p1326_p11, %p1323_p10 }
  0x3a   :  { %1331 = shalt.err (!%p1328_p12)
}
  0x3b   :  { %s1332_s14 = scalar_lea.vmem %s1468_s17, 2048  ;;  %p1337_p0 = scmp.lt.s32.totalorder %s1468_s17, %s1468_s17 }
  0x3c   :  { %p1333_p13 = scmp.ne.s32.totalorder %s1468_s17, %s1332_s14  ;;  %p1338_p1 = scmp.lt.s32.totalorder %s1332_s14, %s1332_s14 }
  0x3e   :  { %p1339_p2 = por %p1338_p1, %p1337_p0 }
  0x40   :  { %p1340_p3 = pnand %p1339_p2, %p1333_p13 }
  0x42   :  { %1343 = shalt.err (!%p1340_p3)
}
  0x43   :  { %73 = dma.hbm_to_vmem [thread:$0]  %s1596_s7, 2048, %s1468_s17, [#allocation9], %s1376_s21, %s1376_s21, %s1377_s22  }
  0x44   :  { %1366 = dma.done.wait [#allocation3], 256  }
  0x45   :  { %1367 = vsyncadd [#allocation3], 4294967040 }
  0x46   :  { %1368 = dma.done.wait [#allocation6], 8192  }
  0x47   :  { %1369 = vsyncadd [#allocation6], 4294959104 }
  0x48   :  { %1370 = dma.done.wait [#allocation9], 2048  }
  0x49   :  { %1371 = vsyncadd [#allocation9], 4294965248  ;;  %v90_v0 = vld [vmem:[#allocation5] sm:$0xff]  ;;  %v91_v1 = vld [vmem:[#allocation5 + $0x8] sm:$0xff]  ;;  %s1380_s10 = smov [#allocation10]  }
  0x4a   :  { %v92_v2 = vld [vmem:[#allocation5 + $0x10] sm:$0xff]  ;;  %v1077_v3 = vpack.c.bf16 %v91_v1, %v90_v0  ;;  %v93_v4 = vld [vmem:[#allocation5 + $0x18] sm:$0xff]  ;;  %v94_v6 = vld [vmem:[#allocation5 + $0x20] sm:$0xff]  ;;  %s781_s14 = sshll.u32 %s1380_s10, 4  ;;  %s782_s14 = int_to_ptr.vmem [resolvable:$true] %s781_s14 }
  0x4b   :  { %v1081_v5 = vpack.c.bf16 %v93_v4, %v92_v2  ;;  %v95_v7 = vld [vmem:[#allocation5 + $0x28] sm:$0xff]  ;;  %v96_v9 = vld [vmem:[#allocation5 + $0x30] sm:$0xff]  ;;  %v97_v10 = vld [vmem:[#allocation5 + $0x38] sm:$0xff]  ;;  %p1349_p5 = scmp.lt.s32.totalorder %s782_s14, %s782_s14 }
  0x4c   :  { %1078 = vmatprep.subr.bf16.mxu0 %v1077_v3  ;;  %v1085_v8 = vpack.c.bf16 %v95_v7, %v94_v6  ;;  %v88_v11 = vld [vmem:[#allocation2] sm:$0xff]  ;;  %v194_v12 = vld [vmem:[#allocation7] sm:$0xff]  ;;  %v195_v13 = vld [vmem:[#allocation7 + $0x8] sm:$0xff]  ;;  %v1089_v20 = vpack.c.bf16 %v97_v10, %v96_v9 }
  0x4d   :  { %1080 = vmatpush3.bf16.msra.mxu0 %v1077_v3  ;;  %934 = vmatprep.mubr.f32.mxu0 %v88_v11  ;;  %v196_v14 = vld [vmem:[#allocation7 + $0x10] sm:$0xff]  ;;  %v1109_v15 = vpack.c.bf16 %v195_v13, %v194_v12  ;;  %v197_v16 = vld [vmem:[#allocation7 + $0x18] sm:$0xff]  ;;  %v198_v18 = vld [vmem:[#allocation7 + $0x20] sm:$0xff] }
  0x4e   :  { %1082 = vmatprep.subr.bf16.mxu0 %v1081_v5  ;;  %v1113_v17 = vpack.c.bf16 %v197_v16, %v196_v14  ;;  %v199_v19 = vld [vmem:[#allocation7 + $0x28] sm:$0xff]  ;;  %v98_v21 = vld [vmem:[#allocation5 + $0x40] sm:$0xff]  ;;  %v200_v24 = vld [vmem:[#allocation7 + $0x30] sm:$0xff] }
  0x4f   :  { %1110 = vmatprep.subr.bf16.mxu1 %v1109_v15  ;;  %v99_v22 = vld [vmem:[#allocation5 + $0x48] sm:$0xff]  ;;  %v1117_v23 = vpack.c.bf16 %v199_v19, %v198_v18  ;;  %v201_v25 = vld [vmem:[#allocation7 + $0x38] sm:$0xff]  ;;  %v100_v27 = vld [vmem:[#allocation5 + $0x50] sm:$0xff] }
  0x50   :  { %1112 = vmatpush3.bf16.msra.mxu1 %v1109_v15  ;;  %v1093_v26 = vpack.c.bf16 %v99_v22, %v98_v21  ;;  %v101_v28 = vld [vmem:[#allocation5 + $0x58] sm:$0xff]  ;;  %v1121_v29 = vpack.c.bf16 %v201_v25, %v200_v24  ;;  %v202_v30 = vld [vmem:[#allocation7 + $0x40] sm:$0xff]  ;;  %v203_v31 = vld [vmem:[#allocation7 + $0x48] sm:$0xff] }
  0x51   :  { %1084 = vmatpush3.bf16.msra.mxu0 %v1081_v5  ;;  %1114 = vmatprep.subr.bf16.mxu1 %v1113_v17  ;;  %v1097_v32 = vpack.c.bf16 %v101_v28, %v100_v27  ;;  %v102_v33 = vld [vmem:[#allocation5 + $0x60] sm:$0xff]  ;;  %v103_v34 = vld [vmem:[#allocation5 + $0x68] sm:$0xff]  ;;  %v1125_v35 = vpack.c.bf16 %v203_v31, %v202_v30  ;;  %v204_v36 = vld [vmem:[#allocation7 + $0x50] sm:$0xff] }
  0x52   :  { %1086 = vmatprep.subr.bf16.mxu0 %v1085_v8  ;;  %v205_v37 = vld [vmem:[#allocation7 + $0x58] sm:$0xff]  ;;  %v1101_v38 = vpack.c.bf16 %v103_v34, %v102_v33  ;;  %v104_v39 = vld [vmem:[#allocation5 + $0x70] sm:$0xff]  ;;  %v206_v44 = vld [vmem:[#allocation7 + $0x60] sm:$0xff] }
  0x53   :  { %v105_v40 = vld [vmem:[#allocation5 + $0x78] sm:$0xff]  ;;  %v1129_v41 = vpack.c.bf16 %v205_v37, %v204_v36  ;;  %v207_v45 = vld [vmem:[#allocation7 + $0x68] sm:$0xff]  ;;  %v208_v47 = vld [vmem:[#allocation7 + $0x70] sm:$0xff] }
  0x54   :  { %1116 = vmatpush3.bf16.msra.mxu1 %v1113_v17  ;;  %v1105_v42 = vpack.c.bf16 %v105_v40, %v104_v39  ;;  %v89_v43 = vld [vmem:[#allocation2 + $0x8] sm:$0xff]  ;;  %v1133_v46 = vpack.c.bf16 %v207_v45, %v206_v44  ;;  %v795_v50 = vld [vmem:[%s1591_s2] ss:$0 sm:$0xff]  ;;  %v354_v9 = vld [vmem:[#allocation7 + $0x88] sm:$0xff] }
  0x55   :  { %1088 = vmatpush3.bf16.msra.mxu0 %v1085_v8  ;;  %1118 = vmatprep.subr.bf16.mxu1 %v1117_v23  ;;  %v209_v48 = vld [vmem:[#allocation7 + $0x78] sm:$0xff]  ;;  %v796_v59 = vld [vmem:[%s1593_s4] ss:$0 sm:$0xff]  ;;  %v353_v8 = vld [vmem:[#allocation7 + $0x80] sm:$0xff] }
  0x56   :  { %1090 = vmatprep.subr.bf16.mxu0 %v1089_v20  ;;  %v1137_v49 = vpack.c.bf16 %v209_v48, %v208_v47  ;;  %v1141_v10 = vpack.c.bf16 %v354_v9, %v353_v8  ;;  %v355_v11 = vld [vmem:[#allocation7 + $0x90] sm:$0xff]  ;;  %v356_v12 = vld [vmem:[#allocation7 + $0x98] sm:$0xff]  ;;  %v357_v14 = vld [vmem:[#allocation7 + $0xa0] sm:$0xff] }
  0x57   :  { %v1145_v13 = vpack.c.bf16 %v356_v12, %v355_v11  ;;  %v358_v15 = vld [vmem:[#allocation7 + $0xa8] sm:$0xff]  ;;  %v359_v17 = vld [vmem:[#allocation7 + $0xb0] sm:$0xff]  ;;  %v360_v18 = vld [vmem:[#allocation7 + $0xb8] sm:$0xff] }
  0x58   :  { %1120 = vmatpush3.bf16.msra.mxu1 %v1117_v23  ;;  %v1149_v16 = vpack.c.bf16 %v358_v15, %v357_v14  ;;  %v1153_v19 = vpack.c.bf16 %v360_v18, %v359_v17  ;;  %v362_v21 = vld [vmem:[#allocation7 + $0xc8] sm:$0xff]  ;;  %v363_v22 = vld [vmem:[#allocation7 + $0xd0] sm:$0xff]  ;;  %v364_v24 = vld [vmem:[#allocation7 + $0xd8] sm:$0xff] }
  0x59   :  { %1092 = vmatpush3.bf16.msra.mxu0 %v1089_v20  ;;  %1122 = vmatprep.subr.bf16.mxu1 %v1121_v29  ;;  %v361_v20 = vld [vmem:[#allocation7 + $0xc0] sm:$0xff]  ;;  %v1161_v25 = vpack.c.bf16 %v364_v24, %v363_v22  ;;  %v366_v27 = vld [vmem:[#allocation7 + $0xe8] sm:$0xff]  ;;  %v368_v30 = vld [vmem:[#allocation7 + $0xf8] sm:$0xff] }
  0x5a   :  { %1094 = vmatprep.subr.bf16.mxu0 %v1093_v26  ;;  %v1157_v23 = vpack.c.bf16 %v362_v21, %v361_v20  ;;  %v516_v14 = vld [vmem:[#allocation7 + $0x108] sm:$0xff]  ;;  %v518_v17 = vld [vmem:[#allocation7 + $0x118] sm:$0xff]  ;;  %v521_v22 = vld [vmem:[#allocation7 + $0x130] sm:$0xff] }
  0x5b   :  { %v520_v20 = vld [vmem:[#allocation7 + $0x128] sm:$0xff] }
  0x5c   :  { %1124 = vmatpush3.bf16.msra.mxu1 %v1121_v29  ;;  %v367_v29 = vld [vmem:[#allocation7 + $0xf0] sm:$0xff] }
  0x5d   :  { %1096 = vmatpush3.bf16.msra.mxu0 %v1093_v26  ;;  %1126 = vmatprep.subr.bf16.mxu1 %v1125_v35  ;;  %v365_v26 = vld [vmem:[#allocation7 + $0xe0] sm:$0xff]  ;;  %v1169_v31 = vpack.c.bf16 %v368_v30, %v367_v29  ;;  %v526_v29 = vld [vmem:[#allocation7 + $0x158] sm:$0xff] }
  0x5e   :  { %1098 = vmatprep.subr.bf16.mxu0 %v1097_v32  ;;  %v1165_v28 = vpack.c.bf16 %v366_v27, %v365_v26  ;;  %v524_v26 = vld [vmem:[#allocation7 + $0x148] sm:$0xff]  ;;  %v525_v27 = vld [vmem:[#allocation7 + $0x150] sm:$0xff] }
  0x5f   :  { %v1193_v30 = vpack.c.bf16 %v526_v29, %v525_v27  ;;  %v682_v27 = vld [vmem:[#allocation8 + $0x30] sm:$0xff] }
  0x60   :  { %1128 = vmatpush3.bf16.msra.mxu1 %v1125_v35 }
  0x61   :  { %1100 = vmatpush3.bf16.msra.mxu0 %v1097_v32  ;;  %1130 = vmatprep.subr.bf16.mxu1 %v1129_v41 }
  0x62   :  { %1102 = vmatprep.subr.bf16.mxu0 %v1101_v38 }
  0x64   :  { %1132 = vmatpush3.bf16.msra.mxu1 %v1129_v41 }
  0x65   :  { %1104 = vmatpush3.bf16.msra.mxu0 %v1101_v38  ;;  %1134 = vmatprep.subr.bf16.mxu1 %v1133_v46 }
  0x66   :  { %1106 = vmatprep.subr.bf16.mxu0 %v1105_v42 }
  0x68   :  { %1136 = vmatpush3.bf16.msra.mxu1 %v1133_v46 }
  0x69   :  { %1108 = vmatpush3.bf16.msra.mxu0 %v1105_v42  ;;  %1138 = vmatprep.subr.bf16.mxu1 %v1137_v49 }
  0x6a   :  { %1142 = vmatprep.subr.bf16.mxu0 %v1141_v10 }
  0x6c   :  { %935 = vmatmul.mubr.f32.vlgmr.msra.gmra.mrb[0].mxu0 %v89_v43  ;;  %1140 = vmatpush3.bf16.msra.mxu1 %v1137_v49 }
  0x6d   :  { %1144 = vmatpush3.bf16.msra.mxu0 %v1141_v10 }
  0x6e   :  { %1146 = vmatprep.subr.bf16.mxu0 %v1145_v13 }
  0x71   :  { %1148 = vmatpush3.bf16.msra.mxu0 %v1145_v13  ;;  %v515_v13 = vld [vmem:[#allocation7 + $0x100] sm:$0xff] }
  0x72   :  { %1150 = vmatprep.subr.bf16.mxu0 %v1149_v16  ;;  %v1173_v15 = vpack.c.bf16 %v516_v14, %v515_v13 }
  0x74   :  { %1174 = vmatprep.subr.bf16.mxu1 %v1173_v15 }
  0x75   :  { %1152 = vmatpush3.bf16.msra.mxu0 %v1149_v16  ;;  %v517_v16 = vld [vmem:[#allocation7 + $0x110] sm:$0xff] }
  0x76   :  { %1154 = vmatprep.subr.bf16.mxu0 %v1153_v19  ;;  %v1177_v18 = vpack.c.bf16 %v518_v17, %v517_v16 }
  0x79   :  { %1156 = vmatpush3.bf16.msra.mxu0 %v1153_v19  ;;  %v519_v19 = vld [vmem:[#allocation7 + $0x120] sm:$0xff] }
  0x7a   :  { %1158 = vmatprep.subr.bf16.mxu0 %v1157_v23  ;;  %v1181_v21 = vpack.c.bf16 %v520_v20, %v519_v19  ;;  %v677_v19 = vld [vmem:[#allocation8 + $0x8] sm:$0xff] }
  0x7d   :  { %1160 = vmatpush3.bf16.msra.mxu0 %v1157_v23  ;;  %v522_v23 = vld [vmem:[#allocation7 + $0x138] sm:$0xff] }
  0x7e   :  { %1162 = vmatprep.subr.bf16.mxu0 %v1161_v25  ;;  %v1185_v24 = vpack.c.bf16 %v522_v23, %v521_v22  ;;  %v679_v22 = vld [vmem:[#allocation8 + $0x18] sm:$0xff] }
  0x81   :  { %1164 = vmatpush3.bf16.msra.mxu0 %v1161_v25  ;;  %v523_v25 = vld [vmem:[#allocation7 + $0x140] sm:$0xff] }
  0x82   :  { %1166 = vmatprep.subr.bf16.mxu0 %v1165_v28 }
  0x85   :  { %1168 = vmatpush3.bf16.msra.mxu0 %v1165_v28  ;;  %v1189_v28 = vpack.c.bf16 %v524_v26, %v523_v25  ;;  %v681_v25 = vld [vmem:[#allocation8 + $0x28] sm:$0xff] }
  0x86   :  { %1170 = vmatprep.subr.bf16.mxu0 %v1169_v31 }
  0x89   :  { %1172 = vmatpush3.bf16.msra.mxu0 %v1169_v31  ;;  %v527_v31 = vld [vmem:[#allocation7 + $0x160] sm:$0xff] }
 0x13f   :  { %v936_v51 = vpop.f32.mrb[0].mxu0 }
 0x140   :  { %v185_v52 = vadd.f32 %v936_v51, %v795_v50  ;;  %v179_v53 = vpop.f32.mrb[1].mxu0 }
 0x141   :  { %v180_v54 = vadd.f32 %v795_v50, %v179_v53  ;;  %v797_v50 = vld [vmem:[%s1594_s5] ss:$0 sm:$0xff] }
 0x142   :  { %v191_v55 = vmul.f32 0.01, %v185_v52  ;;  %vm189_vm1 = vcmp.gt.f32.partialorder %v185_v52, 0.0 }
 0x143   :  { %vm188_vm0 = vcmp.gt.f32.partialorder %v180_v54, 0.0  ;;  %v190_v56 = vmul.f32 0.01, %v180_v54 }
 0x144   :  { %v193_v58 = vsel %vm189_vm1, %v185_v52, %v191_v55  ;;  %v798_v52 = vld [vmem:[%s1595_s6] ss:$0 sm:$0xff] }
 0x145   :  { %v192_v57 = vsel %vm188_vm0, %v180_v54, %v190_v56 }
 0x146   :  { %969 = vmatprep.mubr.f32.mxu1 %v192_v57 }
 0x147   :  { %970 = vmatmul.mubr.f32.vlgmr.msra.gmra.mrb[0].mxu1 %v193_v58 }
 0x148   :  { %1176 = vmatpush3.bf16.msra.mxu1 %v1173_v15 }
 0x149   :  { %1178 = vmatprep.subr.bf16.mxu1 %v1177_v18 }
 0x14c   :  { %1180 = vmatpush3.bf16.msra.mxu1 %v1177_v18  ;;  %v676_v18 = vld [vmem:[#allocation8] sm:$0xff] }
 0x14d   :  { %1182 = vmatprep.subr.bf16.mxu1 %v1181_v21  ;;  %v1205_v20 = vpack.c.bf16 %v677_v19, %v676_v18 }
 0x14f   :  { %1206 = vmatprep.subr.bf16.mxu0 %v1205_v20 }
 0x150   :  { %1184 = vmatpush3.bf16.msra.mxu1 %v1181_v21  ;;  %v678_v21 = vld [vmem:[#allocation8 + $0x10] sm:$0xff] }
 0x151   :  { %1186 = vmatprep.subr.bf16.mxu1 %v1185_v24  ;;  %v1209_v23 = vpack.c.bf16 %v679_v22, %v678_v21 }
 0x154   :  { %1188 = vmatpush3.bf16.msra.mxu1 %v1185_v24  ;;  %v680_v24 = vld [vmem:[#allocation8 + $0x20] sm:$0xff] }
 0x155   :  { %1190 = vmatprep.subr.bf16.mxu1 %v1189_v28  ;;  %v1213_v26 = vpack.c.bf16 %v681_v25, %v680_v24 }
 0x158   :  { %1192 = vmatpush3.bf16.msra.mxu1 %v1189_v28  ;;  %v683_v28 = vld [vmem:[#allocation8 + $0x38] sm:$0xff] }
 0x159   :  { %1194 = vmatprep.subr.bf16.mxu1 %v1193_v30  ;;  %v1217_v29 = vpack.c.bf16 %v683_v28, %v682_v27 }
 0x15c   :  { %1196 = vmatpush3.bf16.msra.mxu1 %v1193_v30  ;;  %v684_v30 = vld [vmem:[#allocation8 + $0x40] sm:$0xff] }
 0x21a   :  { %v971_v60 = vpop.f32.mrb[0].mxu1 }
 0x21b   :  { %v289_v61 = vadd.f32 %v971_v60, %v796_v59  ;;  %v283_v62 = vpop.f32.mrb[1].mxu1 }
 0x21c   :  { %v284_v63 = vadd.f32 %v796_v59, %v283_v62 }
 0x21d   :  { %vm293_vm2 = vcmp.gt.f32.partialorder %v289_v61, 0.0  ;;  %v295_v0 = vmul.f32 0.01, %v289_v61 }
 0x21e   :  { %vm292_vm3 = vcmp.gt.f32.partialorder %v284_v63, 0.0  ;;  %v294_v1 = vmul.f32 0.01, %v284_v63 }
 0x21f   :  { %v297_v3 = vsel %vm293_vm2, %v289_v61, %v295_v0  ;;  %v800_v0 = vld [vmem:[%s1593_s4 + $0x1] ss:$0 sm:$0xff] }
 0x220   :  { %v296_v2 = vsel %vm292_vm3, %v284_v63, %v294_v1  ;;  %v1516_v6 = vadd.f32 %v297_v3, %v193_v58 }
 0x221   :  { %v1511_v4 = vadd.f32 %v296_v2, %v192_v57 }
 0x222   :  { %v305_v7 = vmul.f32 %v1516_v6, %v1516_v6 }
 0x223   :  { %300 = vadd.xlane.f32.xlu0 %v1511_v4  ;;  %v304_v5 = vmul.f32 %v1511_v4, %v1511_v4 }
 0x225   :  { %306 = vadd.xlane.f32.xlu1 %v304_v5 }
 0x227   :  { %302 = vadd.xlane.f32.xlu0 %v1516_v6 }
 0x229   :  { %308 = vadd.xlane.f32.xlu1 %v305_v7 }
 0x2b0   :  { %v301_v32 = vpop.xlane.xlu0 %300 }
 0x2b1   :  { %v310_v33 = vmul.f32 0.03125, %v301_v32  ;;  %v528_v32 = vld [vmem:[#allocation7 + $0x168] sm:$0xff] }
 0x2b2   :  { %v307_v34 = vpop.xlane.xlu1 %306 }
 0x2b3   :  { %v314_v35 = vmul.f32 %v310_v33, %v310_v33  ;;  %v312_v36 = vmul.f32 0.03125, %v307_v34  ;;  %v320_v48 = vsub.f32 %v1511_v4, %v310_v33  ;;  %v1197_v33 = vpack.c.bf16 %v528_v32, %v527_v31  ;;  %v529_v34 = vld [vmem:[#allocation7 + $0x170] sm:$0xff]  ;;  %v685_v31 = vld [vmem:[#allocation8 + $0x48] sm:$0xff] }
 0x2b4   :  { %v303_v37 = vpop.xlane.xlu0 %302  ;;  %v686_v32 = vld [vmem:[#allocation8 + $0x50] sm:$0xff] }
 0x2b5   :  { %v316_v38 = vsub.f32 %v312_v36, %v314_v35  ;;  %v311_v39 = vmul.f32 0.03125, %v303_v37  ;;  %v530_v35 = vld [vmem:[#allocation7 + $0x178] sm:$0xff]  ;;  %1198 = vmatprep.subr.bf16.mxu1 %v1197_v33 }
 0x2b6   :  { %v309_v40 = vpop.xlane.xlu1 %308  ;;  %v1201_v36 = vpack.c.bf16 %v530_v35, %v529_v34  ;;  %1200 = vmatpush3.bf16.msra.mxu1 %v1197_v33  ;;  %v1221_v33 = vpack.c.bf16 %v685_v31, %v684_v30  ;;  %v687_v34 = vld [vmem:[#allocation8 + $0x58] sm:$0xff] }
 0x2b7   :  { %v318_v41 = vmax.f32 %v316_v38, 0.0  ;;  %v315_v42 = vmul.f32 %v311_v39, %v311_v39  ;;  %v313_v43 = vmul.f32 0.03125, %v309_v40  ;;  %v321_v53 = vsub.f32 %v1516_v6, %v311_v39 }
 0x2b8   :  { %1202 = vmatprep.subr.bf16.mxu1 %v1201_v36  ;;  %v1225_v35 = vpack.c.bf16 %v687_v34, %v686_v32 }
 0x2b9   :  { %v322_v44 = vadd.f32 1e-05, %v318_v41  ;;  %v317_v45 = vsub.f32 %v313_v43, %v315_v42 }
 0x2ba   :  { %1204 = vmatpush3.bf16.msra.mxu1 %v1201_v36  ;;  %v688_v36 = vld [vmem:[#allocation8 + $0x60] sm:$0xff] }
 0x2bb   :  { %1244 = vrsqrt.f32 %v322_v44  ;;  %v319_v46 = vmax.f32 %v317_v45, 0.0 }
 0x2bd   :  { %v323_v47 = vadd.f32 1e-05, %v319_v46 }
 0x2bf   :  { %1246 = vrsqrt.f32 %v323_v47 }
 0x2c5   :  { %v1245_v49 = vpop.eup %1244 }
 0x2c6   :  { %v326_v51 = vmul.f32 %v1245_v49, %v320_v48 }
 0x2c8   :  { %v335_v54 = vmul.f32 %v797_v50, %v326_v51 }
 0x2c9   :  { %v1247_v55 = vpop.eup %1246 }
 0x2ca   :  { %v344_v56 = vadd.f32 %v798_v52, %v335_v54  ;;  %v327_v57 = vmul.f32 %v1247_v55, %v321_v53 }
 0x2cc   :  { %vm346_vm4 = vcmp.gt.f32.partialorder %v344_v56, 0.0  ;;  %v348_v58 = vmul.f32 0.01, %v344_v56  ;;  %v336_v59 = vmul.f32 %v797_v50, %v327_v57 }
 0x2ce   :  { %v350_v60 = vsel %vm346_vm4, %v344_v56, %v348_v58  ;;  %v345_v61 = vadd.f32 %v798_v52, %v336_v59  ;;  %v802_v56 = vld [vmem:[%s1594_s5 + $0x1] ss:$0 sm:$0xff] }
 0x2cf   :  { %1004 = vmatprep.mubr.f32.mxu0 %v350_v60 }
 0x2d0   :  { %vm347_vm5 = vcmp.gt.f32.partialorder %v345_v61, 0.0  ;;  %v349_v62 = vmul.f32 0.01, %v345_v61 }
 0x2d2   :  { %v351_v63 = vsel %vm347_vm5, %v345_v61, %v349_v62 }
 0x2d3   :  { %1005 = vmatmul.mubr.f32.vlgmr.msra.gmra.mrb[2].mxu0 %v351_v63 }
 0x2d4   :  { %1208 = vmatpush3.bf16.msra.mxu0 %v1205_v20 }
 0x2d5   :  { %1210 = vmatprep.subr.bf16.mxu0 %v1209_v23 }
 0x2d8   :  { %1212 = vmatpush3.bf16.msra.mxu0 %v1209_v23 }
 0x2d9   :  { %1214 = vmatprep.subr.bf16.mxu0 %v1213_v26 }
 0x2dc   :  { %1216 = vmatpush3.bf16.msra.mxu0 %v1213_v26 }
 0x2dd   :  { %1218 = vmatprep.subr.bf16.mxu0 %v1217_v29 }
 0x2e0   :  { %1220 = vmatpush3.bf16.msra.mxu0 %v1217_v29 }
 0x2e1   :  { %1222 = vmatprep.subr.bf16.mxu0 %v1221_v33 }
 0x2e4   :  { %1224 = vmatpush3.bf16.msra.mxu0 %v1221_v33 }
 0x2e5   :  { %1226 = vmatprep.subr.bf16.mxu0 %v1225_v35 }
 0x2e8   :  { %1228 = vmatpush3.bf16.msra.mxu0 %v1225_v35 }
 0x3a6   :  { %v1006_v1 = vpop.f32.mrb[2].mxu0 }
 0x3a7   :  { %v449_v2 = vadd.f32 %v1006_v1, %v800_v0  ;;  %v443_v3 = vpop.f32.mrb[3].mxu0 }
 0x3a8   :  { %v444_v4 = vadd.f32 %v800_v0, %v443_v3 }
 0x3a9   :  { %vm453_vm6 = vcmp.gt.f32.partialorder %v449_v2, 0.0  ;;  %v455_v5 = vmul.f32 0.01, %v449_v2 }
 0x3aa   :  { %vm452_vm7 = vcmp.gt.f32.partialorder %v444_v4, 0.0  ;;  %v454_v6 = vmul.f32 0.01, %v444_v4 }
 0x3ab   :  { %v457_v7 = vsel %vm453_vm6, %v449_v2, %v455_v5  ;;  %v806_v5 = vld [vmem:[%s1593_s4 + $0x2] ss:$0 sm:$0xff] }
 0x3ac   :  { %v1532_v8 = vadd.f32 %v457_v7, %v351_v63  ;;  %v456_v9 = vsel %vm452_vm7, %v444_v4, %v454_v6 }
 0x3ad   :  { %v1534_v10 = vadd.f32 %v456_v9, %v350_v60  ;;  %v804_v60 = vld [vmem:[%s1595_s6 + $0x1] ss:$0 sm:$0xff] }
 0x3ae   :  { %462 = vadd.xlane.f32.xlu1 %v1532_v8  ;;  %v465_v11 = vmul.f32 %v1532_v8, %v1532_v8 }
 0x3af   :  { %460 = vadd.xlane.f32.xlu0 %v1534_v10  ;;  %v464_v12 = vmul.f32 %v1534_v10, %v1534_v10 }
 0x3b2   :  { %468 = vadd.xlane.f32.xlu1 %v465_v11 }
 0x3b3   :  { %466 = vadd.xlane.f32.xlu0 %v464_v12 }
 0x43b   :  { %v463_v37 = vpop.xlane.xlu1 %462 }
 0x43c   :  { %v471_v38 = vmul.f32 0.03125, %v463_v37  ;;  %v461_v39 = vpop.xlane.xlu0 %460  ;;  %v689_v37 = vld [vmem:[#allocation8 + $0x68] sm:$0xff] }
 0x43d   :  { %v470_v40 = vmul.f32 0.03125, %v461_v39  ;;  %v690_v39 = vld [vmem:[#allocation8 + $0x70] sm:$0xff] }
 0x43e   :  { %v475_v42 = vmul.f32 %v471_v38, %v471_v38  ;;  %v481_v53 = vsub.f32 %v1532_v8, %v471_v38  ;;  %v1229_v38 = vpack.c.bf16 %v689_v37, %v688_v36 }
 0x43f   :  { %v469_v41 = vpop.xlane.xlu1 %468  ;;  %v474_v45 = vmul.f32 %v470_v40, %v470_v40  ;;  %v480_v55 = vsub.f32 %v1534_v10, %v470_v40  ;;  %v691_v40 = vld [vmem:[#allocation8 + $0x78] sm:$0xff] }
 0x440   :  { %v473_v43 = vmul.f32 0.03125, %v469_v41  ;;  %v467_v44 = vpop.xlane.xlu0 %466  ;;  %1230 = vmatprep.subr.bf16.mxu0 %v1229_v38  ;;  %v1233_v41 = vpack.c.bf16 %v691_v40, %v690_v39 }
 0x441   :  { %v472_v46 = vmul.f32 0.03125, %v467_v44  ;;  %1232 = vmatpush3.bf16.msra.mxu0 %v1229_v38 }
 0x442   :  { %v477_v47 = vsub.f32 %v473_v43, %v475_v42  ;;  %1234 = vmatprep.subr.bf16.mxu0 %v1233_v41 }
 0x443   :  { %v476_v48 = vsub.f32 %v472_v46, %v474_v45 }
 0x444   :  { %v479_v49 = vmax.f32 %v477_v47, 0.0 }
 0x445   :  { %v478_v50 = vmax.f32 %v476_v48, 0.0  ;;  %1236 = vmatpush3.bf16.msra.mxu0 %v1233_v41 }
 0x446   :  { %v483_v51 = vadd.f32 1e-05, %v479_v49 }
 0x447   :  { %v482_v52 = vadd.f32 1e-05, %v478_v50 }
 0x448   :  { %1248 = vrsqrt.f32 %v483_v51 }
 0x449   :  { %1250 = vrsqrt.f32 %v482_v52 }
 0x452   :  { %v1249_v54 = vpop.eup %1248 }
 0x453   :  { %v1251_v57 = vpop.eup %1250  ;;  %v487_v58 = vmul.f32 %v1249_v54, %v481_v53 }
 0x454   :  { %v486_v59 = vmul.f32 %v1251_v57, %v480_v55 }
 0x455   :  { %v497_v61 = vmul.f32 %v802_v56, %v487_v58 }
 0x456   :  { %v496_v62 = vmul.f32 %v802_v56, %v486_v59 }
 0x457   :  { %v507_v63 = vadd.f32 %v804_v60, %v497_v61  ;;  %v808_v61 = vld [vmem:[%s1594_s5 + $0x2] ss:$0 sm:$0xff] }
 0x458   :  { %v506_v0 = vadd.f32 %v804_v60, %v496_v62 }
 0x459   :  { %v511_v1 = vmul.f32 0.01, %v507_v63  ;;  %vm509_vm9 = vcmp.gt.f32.partialorder %v507_v63, 0.0 }
 0x45a   :  { %vm508_vm8 = vcmp.gt.f32.partialorder %v506_v0, 0.0  ;;  %v510_v2 = vmul.f32 0.01, %v506_v0 }
 0x45b   :  { %v513_v4 = vsel %vm509_vm9, %v507_v63, %v511_v1  ;;  %v810_v1 = vld [vmem:[%s1595_s6 + $0x2] ss:$0 sm:$0xff]  ;;  %s1344_s6 = scalar_lea.vmem %s782_s14, 256 }
 0x45c   :  { %v512_v3 = vsel %vm508_vm8, %v506_v0, %v510_v2  ;;  %p1345_p4 = scmp.ne.s32.totalorder %s782_s14, %s1344_s6  ;;  %p1350_p6 = scmp.lt.s32.totalorder %s1344_s6, %s1344_s6 }
 0x45d   :  { %1039 = vmatprep.mubr.f32.mxu1 %v512_v3 }
 0x45e   :  { %1040 = vmatmul.mubr.f32.vlgmr.msra.gmra.mrb[2].mxu1 %v513_v4  ;;  %p1351_p7 = por %p1350_p6, %p1349_p5 }
 0x460   :  { %p1352_p8 = pnand %p1351_p7, %p1345_p4 }
 0x531   :  { %v1041_v6 = vpop.f32.mrb[2].mxu1 }
 0x532   :  { %v611_v7 = vadd.f32 %v1041_v6, %v806_v5  ;;  %v605_v8 = vpop.f32.mrb[3].mxu1 }
 0x533   :  { %v606_v9 = vadd.f32 %v806_v5, %v605_v8 }
 0x534   :  { %vm615_vm10 = vcmp.gt.f32.partialorder %v611_v7, 0.0  ;;  %v617_v10 = vmul.f32 0.01, %v611_v7 }
 0x535   :  { %vm614_vm11 = vcmp.gt.f32.partialorder %v606_v9, 0.0  ;;  %v616_v11 = vmul.f32 0.01, %v606_v9 }
 0x536   :  { %v619_v12 = vsel %vm615_vm10, %v611_v7, %v617_v10  ;;  %v811_v10 = vld [vmem:[%s1597_s8] ss:$0 sm:$0xff] }
 0x537   :  { %v1553_v13 = vadd.f32 %v619_v12, %v513_v4  ;;  %v618_v14 = vsel %vm614_vm11, %v606_v9, %v616_v11 }
 0x538   :  { %v1555_v15 = vadd.f32 %v618_v14, %v512_v3 }
 0x539   :  { %624 = vadd.xlane.f32.xlu1 %v1553_v13  ;;  %v627_v16 = vmul.f32 %v1553_v13, %v1553_v13 }
 0x53a   :  { %622 = vadd.xlane.f32.xlu0 %v1555_v15  ;;  %v626_v17 = vmul.f32 %v1555_v15, %v1555_v15 }
 0x53d   :  { %630 = vadd.xlane.f32.xlu1 %v627_v16 }
 0x53e   :  { %628 = vadd.xlane.f32.xlu0 %v626_v17 }
 0x5c6   :  { %v625_v42 = vpop.xlane.xlu1 %624 }
 0x5c7   :  { %v633_v43 = vmul.f32 0.03125, %v625_v42  ;;  %v623_v44 = vpop.xlane.xlu0 %622 }
 0x5c8   :  { %v632_v45 = vmul.f32 0.03125, %v623_v44 }
 0x5c9   :  { %v637_v47 = vmul.f32 %v633_v43, %v633_v43  ;;  %v643_v58 = vsub.f32 %v1553_v13, %v633_v43 }
 0x5ca   :  { %v631_v46 = vpop.xlane.xlu1 %630  ;;  %v636_v50 = vmul.f32 %v632_v45, %v632_v45  ;;  %v642_v60 = vsub.f32 %v1555_v15, %v632_v45 }
 0x5cb   :  { %v635_v48 = vmul.f32 0.03125, %v631_v46  ;;  %v629_v49 = vpop.xlane.xlu0 %628 }
 0x5cc   :  { %v634_v51 = vmul.f32 0.03125, %v629_v49 }
 0x5cd   :  { %v639_v52 = vsub.f32 %v635_v48, %v637_v47 }
 0x5ce   :  { %v638_v53 = vsub.f32 %v634_v51, %v636_v50 }
 0x5cf   :  { %v641_v54 = vmax.f32 %v639_v52, 0.0 }
 0x5d0   :  { %v640_v55 = vmax.f32 %v638_v53, 0.0 }
 0x5d1   :  { %v645_v56 = vadd.f32 1e-05, %v641_v54 }
 0x5d2   :  { %v644_v57 = vadd.f32 1e-05, %v640_v55 }
 0x5d3   :  { %1252 = vrsqrt.f32 %v645_v56 }
 0x5d4   :  { %1254 = vrsqrt.f32 %v644_v57 }
 0x5dd   :  { %v1253_v59 = vpop.eup %1252 }
 0x5de   :  { %v1255_v62 = vpop.eup %1254  ;;  %v649_v63 = vmul.f32 %v1253_v59, %v643_v58 }
 0x5df   :  { %v648_v0 = vmul.f32 %v1255_v62, %v642_v60 }
 0x5e0   :  { %v659_v2 = vmul.f32 %v808_v61, %v649_v63 }
 0x5e1   :  { %v658_v3 = vmul.f32 %v808_v61, %v648_v0 }
 0x5e2   :  { %v669_v4 = vadd.f32 %v810_v1, %v659_v2 }
 0x5e3   :  { %v668_v5 = vadd.f32 %v810_v1, %v658_v3 }
 0x5e4   :  { %v673_v6 = vmul.f32 0.01, %v669_v4  ;;  %vm671_vm13 = vcmp.gt.f32.partialorder %v669_v4, 0.0 }
 0x5e5   :  { %vm670_vm12 = vcmp.gt.f32.partialorder %v668_v5, 0.0  ;;  %v672_v7 = vmul.f32 0.01, %v668_v5 }
 0x5e6   :  { %v675_v9 = vsel %vm671_vm13, %v669_v4, %v673_v6 }
 0x5e7   :  { %v674_v8 = vsel %vm670_vm12, %v668_v5, %v672_v7 }
 0x5e8   :  { %1074 = vmatprep.mubr.f32.mxu0 %v674_v8 }
 0x5e9   :  { %1075 = vmatmul.mubr.f32.vlgmr.msra.gmra.mrb[4].mxu0 %v675_v9 }
 0x6bc   :  { %v1076_v11 = vpop.f32.mrb[4].mxu0 }
 0x6bd   :  { %v771_v12 = vadd.f32 %v1076_v11, %v811_v10  ;;  %v765_v13 = vpop.f32.mrb[5].mxu0 }
 0x6be   :  { %v766_v14 = vadd.f32 %v811_v10, %v765_v13 }
 0x6bf   :  { %775 = vst [vmem:[#allocation10 + $0x8] sm:$0xff] %v771_v12 }
 0x6c0   :  { %774 = vst [vmem:[#allocation10] sm:$0xff] %v766_v14 }
 0x6c1   :  { %1355 = shalt.err (!%p1352_p8)
}
 0x6c2   :  { %s1356_s8 = scalar_lea.hbm %s1598_s9, 256 }
 0x6c3   :  { %p1357_p9 = scmp.ne.s32.totalorder %s1598_s9, %s1356_s8  ;;  %p1360_p10 = scmp.lt.u32.totalorder %s1356_s8, %s1598_s9 }
 0x6c5   :  { %p1362_p11 = pnand %p1360_p10, %p1357_p9 }
 0x6c7   :  { %1365 = shalt.err (!%p1362_p11)
}
 0x6c8   :  { %787 = dma.vmem_to_hbm [thread:$0]  %s782_s14, 256, %s1598_s9, [#allocation4], %s1376_s21, %s1376_s21, %s1377_s22  }
 0x6c9   :  { %1372 = dma.done.wait [#allocation4], 256  }
 0x6ca   :  { %1373 = vsyncadd [#allocation4], 4294967040 }
 0x6cb   :  { %791 = vsyncpa [#allocation3], 1 }
 0x6cc   :  { %792 = vsyncpa [#allocation6], 1 }
 0x6cd   :  { %793 = vsyncpa [#allocation9], 1 }
 0x6ce   :  { %794 = vsyncpa [#allocation4], 1 }

</bundles_post_ra>
